<compile_context>
chip_gen: v7x
topology: tpu7x:2x2x1
jax: 0.10.0
libtpu: 0.0.40
codegen_flags: <defaults>
</compile_context>

<pallas_src>
import jax
import jax.numpy as jnp
from jax.experimental import pallas as pl
from jax.experimental.pallas import tpu as pltpu


def null_upsampler(p, patches=None):
    """NullUpsampler.forward(p, patches) -> p. Zero-copy identity (optimal)."""
    del patches  # unused, matching the reference module semantics
    return p


def _hbm_copy_kernel(p_hbm, o_hbm):
    """Whole-array HBM->HBM DMA copy: no VMEM staging, no vregs, no grid."""

    def body(sem):
        cp = pltpu.make_async_copy(p_hbm, o_hbm, sem)
        cp.start()
        cp.wait()

    pl.run_scoped(body, pltpu.SemaphoreType.DMA(()))


def null_upsampler_pallas(p, patches=None, *, alias_input=False,
                          min_pallas_bytes=1 << 20):
    """Pallas identity copy of `p` (fusion-anchor variant of NullUpsampler).

    Issues one direct HBM->HBM DMA for the full array (any shape / dtype).
    Inputs smaller than `min_pallas_bytes` are returned as-is (zero-copy),
    since pallas_call launch overhead would dominate the copy.

    Set alias_input=True (and donate `p` under jit at the caller) to reuse
    the input HBM buffer for the output; without donation XLA inserts a
    defensive copy and the flag is a no-op for performance (numerics are
    unaffected either way).
    """
    del patches  # unused, matching the reference module semantics

    nbytes = p.size * jnp.dtype(p.dtype).itemsize
    if p.size == 0 or nbytes < min_pallas_bytes:
        # Tiny-input dispatch: pure pass-through, zero bytes moved.
        return p

    return pl.pallas_call(
        _hbm_copy_kernel,
        out_shape=jax.ShapeDtypeStruct(p.shape, p.dtype),
        in_specs=[pl.BlockSpec(memory_space=pl.ANY)],   # raw HBM ref, no auto-DMA
        out_specs=pl.BlockSpec(memory_space=pl.ANY),    # raw HBM ref, no auto-DMA
        input_output_aliases=({0: 0} if alias_input else {}),
        cost_estimate=pl.CostEstimate(
            flops=0, transcendentals=0, bytes_accessed=2 * nbytes),
    )(p)


if __name__ == "__main__":
    key = jax.random.PRNGKey(0)
    kp, kq = jax.random.split(key)
    # Small shapes consistent with an NCHW point/feature-map input.
    p = jax.random.normal(kp, (2, 4, 16, 16), dtype=jnp.float32)
    patches = jax.random.normal(kq, (2, 4, 8, 8), dtype=jnp.float32)

    # Optimal path (module semantics): pure pass-through, zero bytes moved.
    out_fast = null_upsampler(p, patches)
    assert out_fast is p

    # Size-dispatched wrapper: tiny input -> zero-copy pass-through.
    out_dispatch = null_upsampler_pallas(p, patches)
    assert out_dispatch is p

    # Forced Pallas path: single HBM->HBM DMA identity copy.
    out_kernel = jax.block_until_ready(
        null_upsampler_pallas(p, patches, min_pallas_bytes=0))
    assert out_kernel.shape == p.shape and out_kernel.dtype == p.dtype
    assert bool(jnp.all(out_kernel == p))

    # Non-128-divisible, oddly shaped input also works — whole-array DMA has
    # no lane/sublane constraints, so no padding path is needed.
    q = jax.random.normal(kq, (3, 5, 7), dtype=jnp.float32)
    out_q = jax.block_until_ready(
        null_upsampler_pallas(q, None, min_pallas_bytes=0))
    assert out_q.shape == q.shape and bool(jnp.all(out_q == q))

    print("KERNEL_OK")
</pallas_src>

<mosaic_0001>
module attributes {stable_mosaic.version = 11 : i64} {
  func.func @_hbm_copy_kernel(%arg0: memref<2x4x16x16xf32, #tpu.memory_space<any>>, %arg1: memref<2x4x16x16xf32, #tpu.memory_space<any>>) attributes {dimension_semantics = [], scalar_prefetch = 0 : i64, scratch_operands = 0 : i64, tpu.core_type = #tpu.core_type<tc>} {
    "tpu.region"() ({
      %0 = tpu.sem_alloc : memref<!tpu.dma_semaphore, #tpu.memory_space<semaphore_mem>>
      tpu.enqueue_dma source(%arg0 : memref<2x4x16x16xf32, #tpu.memory_space<any>>) target(%arg1 : memref<2x4x16x16xf32, #tpu.memory_space<any>>) target_semaphore(%0 : memref<!tpu.dma_semaphore, #tpu.memory_space<semaphore_mem>>)
      tpu.wait_dma2 semaphore(%0 : memref<!tpu.dma_semaphore, #tpu.memory_space<semaphore_mem>>) src(%arg0 : memref<2x4x16x16xf32, #tpu.memory_space<any>>) dst(%arg1 : memref<2x4x16x16xf32, #tpu.memory_space<any>>)
      tpu.yield
    }) : () -> ()
    return
  }
}

</mosaic_0001>

<bundles_post_ra>
// kernel: tpu_custom_call.1
= control target key start
LH: loop header
LB: loop body
LE: loop exit
PB: predicated region body
PF: predicated region fallthrough
CT: control target
= control target key end

     0   :  { %s29_s6 = smov [#allocation2]   ;;  %s30_s7 = smov [#allocation3]   ;;  %s48_s0 = inlined_call_operand.hbm [shape: f32[2,4,16,16], index: 0, kind: input, shape index: {}]   ;;  %s49_s1 = inlined_call_operand.hbm [shape: f32[2,4,16,16], index: 1, kind: output, shape index: {}]  }
   0x1   :  { %s31_s8 = smov 0  }
   0x2   :  { %18 = dma.general %s48_s0, 2048, %s49_s1, %s29_s6, %s30_s7, [#allocation4], %s31_s8, 0  }
   0x3   :  { %27 = dma.done.wait [#allocation2], 2048 }
   0x4   :  { %28 = vsyncadd [#allocation2], 4294965248 }

</bundles_post_ra>
